<compile_context>
chip_gen: v5e
topology: v5e:2x2
jax: 0.10.0
libtpu: 0.0.40
codegen_flags: <defaults>
</compile_context>

<pallas_src>
import functools

import jax
import jax.numpy as jnp
from jax.experimental import pallas as pl
from jax.experimental.pallas import tpu as pltpu


def cnn_kernel(emb_ref, wconv_ref, bconv_ref, wfc_ref, bfc_ref, out_ref,
               *, L, stride):
    # emb_ref:   (TB, S_pad, E)  bf16  zero-padded embedded tokens (batch tile)
    # wconv_ref: (KH, E, C)      bf16  conv filters, one (E, C) slice per tap
    # bconv_ref: (1, C)          f32   conv bias
    # wfc_ref:   (C, O_pad)      bf16  fc weight, lane-padded to 128 columns
    # bfc_ref:   (1, O_pad)      f32   fc bias (-1e30 on padded columns)
    # out_ref:   (TB, 1, O_pad)  f32   softmax probabilities
    tb, s_pad, e = emb_ref.shape
    kh = wconv_ref.shape[0]
    c = wconv_ref.shape[2]

    emb = emb_ref[...]                                   # (TB, S_pad, E) bf16

    # Conv2d(1, C, (KH, E)) == sum over taps k of a flat (TB*L, E) @ (E, C)
    # matmul on the k-shifted slice.  Accumulate in f32 on the MXU.
    acc = jnp.zeros((tb * L, c), jnp.float32)
    for k in range(kh):                                  # static unroll (KH small)
        if stride == 1:
            xk = emb[:, k:k + L, :]                      # (TB, L, E)
        else:
            xk = jax.lax.slice(emb, (0, k, 0),
                               (tb, k + (L - 1) * stride + 1, e),
                               (1, stride, 1))
        acc = acc + jnp.dot(xk.reshape(tb * L, e), wconv_ref[k],
                            preferred_element_type=jnp.float32)
    conv = acc.reshape(tb, L, c)                         # (TB, L, C) f32

    # Max-pool over the full time axis first; bias + ReLU hoisted past the
    # pool (valid: per-channel constant bias + monotone ReLU).
    pooled = jnp.max(conv, axis=1)                       # (TB, C)
    pooled = jnp.maximum(pooled + bconv_ref[...], 0.0)   # (TB, C) f32

    # TODO(synk): Dropout(p=0.4) is identity in eval mode; train-mode masking
    # (pltpu.prng_random_bits) is intentionally not applied here.

    logits = jnp.dot(pooled.astype(wfc_ref.dtype), wfc_ref[...],
                     preferred_element_type=jnp.float32) + bfc_ref[...]

    # Numerically-stable softmax over the lane-padded axis; padded columns
    # carry bias -1e30 so their exp underflows to exactly 0.
    m = jnp.max(logits, axis=1, keepdims=True)
    ex = jnp.exp(logits - m)
    denom = jnp.sum(ex, axis=1, keepdims=True)
    probs = ex * pl.reciprocal(denom, approx=True)       # (TB, O_pad)
    out_ref[...] = probs[:, None, :]


def cnn_forward(tokens, emb_table, w_conv, b_conv, w_fc, b_fc,
                *, kernel_heights, stride, padding):
    """tokens: (B, S) int32.  Returns (B, output_size) float32 probabilities."""
    B, S = tokens.shape
    V, E = emb_table.shape
    C = w_conv.shape[0]
    O = w_fc.shape[0]
    KH = kernel_heights
    LANE = 128

    S_pad = S + 2 * padding
    L_out = (S_pad - KH) // stride + 1

    # --- glue: fold the conv zero-padding into the embedding gather by
    # padding tokens with an index that maps to an appended all-zero row. ---
    emb_ext = jnp.concatenate(
        [emb_table, jnp.zeros((1, E), emb_table.dtype)], axis=0
    ).astype(jnp.bfloat16)                               # (V+1, E) bf16
    pad_tok = jnp.full((B, padding), V, dtype=tokens.dtype)
    tokens_pad = jnp.concatenate([pad_tok, tokens, pad_tok], axis=1)  # (B,S_pad)
    emb = emb_ext[tokens_pad]                            # (B, S_pad, E) bf16

    # Conv weight (C,1,KH,E) -> (KH, E, C); fc weight (O,C) -> (C, O) padded
    # to a lane-dense 128-wide output; padded bias columns = -1e30.
    wconv = jnp.transpose(w_conv.reshape(C, KH, E), (1, 2, 0)).astype(jnp.bfloat16)
    bconv = b_conv.reshape(1, C).astype(jnp.float32)
    O_pad = max(LANE, ((O + LANE - 1) // LANE) * LANE)
    wfc = jnp.zeros((C, O_pad), jnp.bfloat16).at[:, :O].set(
        jnp.transpose(w_fc).astype(jnp.bfloat16))
    bfc = jnp.full((1, O_pad), -1e30, jnp.float32).at[0, :O].set(
        b_fc.astype(jnp.float32))

    # Shard the batch over (up to) two grid steps so both v7x TensorCores get
    # work; on v5e/v6e it is just a tiny sequential loop.  Everything per
    # step is a few KiB, far below any VMEM limit.
    num_tiles = 2 if (B >= 2 and B % 2 == 0) else 1
    TILE_B = B // num_tiles

    kernel = functools.partial(cnn_kernel, L=L_out, stride=stride)

    out = pl.pallas_call(
        kernel,
        out_shape=jax.ShapeDtypeStruct((B, 1, O_pad), jnp.float32),
        grid_spec=pltpu.PrefetchScalarGridSpec(
            num_scalar_prefetch=0,
            grid=(num_tiles,),
            in_specs=[
                pl.BlockSpec((TILE_B, S_pad, E), lambda b: (b, 0, 0)),
                pl.BlockSpec((KH, E, C), lambda b: (0, 0, 0)),
                pl.BlockSpec((1, C), lambda b: (0, 0)),
                pl.BlockSpec((C, O_pad), lambda b: (0, 0)),
                pl.BlockSpec((1, O_pad), lambda b: (0, 0)),
            ],
            out_specs=pl.BlockSpec((TILE_B, 1, O_pad), lambda b: (b, 0, 0)),
        ),
        compiler_params=pltpu.CompilerParams(
            dimension_semantics=("parallel",)),
    )(emb, wconv, bconv, wfc, bfc)
    return out[:, 0, :O]


def reference_forward(tokens, emb_table, w_conv, b_conv, w_fc, b_fc,
                      *, kernel_heights, stride, padding):
    """Pure-JAX f32 reference of the PyTorch forward (eval mode)."""
    B, S = tokens.shape
    E = emb_table.shape[1]
    C = w_conv.shape[0]
    KH = kernel_heights
    emb = emb_table[tokens]
    emb = jnp.pad(emb, ((0, 0), (padding, padding), (0, 0)))
    L = (S + 2 * padding - KH) // stride + 1
    wmat = w_conv.reshape(C, KH * E)
    windows = jnp.stack(
        [emb[:, l * stride:l * stride + KH, :].reshape(B, KH * E)
         for l in range(L)], axis=1)                     # (B, L, KH*E)
    conv = jnp.einsum("blk,ck->blc", windows, wmat) + b_conv
    pooled = jnp.max(jax.nn.relu(conv), axis=1)
    logits = pooled @ w_fc.T + b_fc
    return jax.nn.softmax(logits, axis=1)


if __name__ == "__main__":
    # Hyperparameters implied by the module's __init__ / forward.
    vocab_size = 50
    emb_size = 32
    padding_idx = 0
    output_size = 4
    out_channels = 16
    kernel_heights = 3
    stride = 1
    padding = 1

    B, S = 2, 8

    key = jax.random.PRNGKey(0)
    k_emb, k_wc, k_bc, k_wf, k_bf, k_x = jax.random.split(key, 6)

    # Deterministic parameter init (shapes match nn.Embedding/nn.Conv2d/nn.Linear).
    emb_table = jax.random.normal(k_emb, (vocab_size, emb_size), jnp.float32)
    emb_table = emb_table.at[padding_idx].set(0.0)       # padding_idx row = 0
    w_conv = 0.1 * jax.random.normal(
        k_wc, (out_channels, 1, kernel_heights, emb_size), jnp.float32)
    b_conv = 0.1 * jax.random.normal(k_bc, (out_channels,), jnp.float32)
    w_fc = 0.1 * jax.random.normal(k_wf, (output_size, out_channels), jnp.float32)
    b_fc = 0.1 * jax.random.normal(k_bf, (output_size,), jnp.float32)

    tokens = jax.random.randint(k_x, (B, S), 0, vocab_size, dtype=jnp.int32)

    probs = cnn_forward(tokens, emb_table, w_conv, b_conv, w_fc, b_fc,
                        kernel_heights=kernel_heights, stride=stride,
                        padding=padding)
    probs = jax.block_until_ready(probs)

    # Sanity: shape, softmax rows sum to ~1 (approx reciprocal -> relaxed tol),
    # and agreement with the pure-JAX f32 reference (bf16 matmul operands).
    assert probs.shape == (B, output_size)
    assert jnp.allclose(jnp.sum(probs, axis=1), 1.0, atol=5e-3)
    ref = reference_forward(tokens, emb_table, w_conv, b_conv, w_fc, b_fc,
                            kernel_heights=kernel_heights, stride=stride,
                            padding=padding)
    assert jnp.allclose(probs, ref, atol=5e-2)
    print("KERNEL_OK")
</pallas_src>

<mosaic_0001>
module attributes {stable_mosaic.version = 11 : i64} {
  func.func @cnn_kernel(%arg0: i32, %arg1: memref<1x10x32xbf16, #tpu.memory_space<vmem>>, %arg2: memref<3x32x16xbf16, #tpu.memory_space<vmem>>, %arg3: memref<1x16xf32, #tpu.memory_space<vmem>>, %arg4: memref<16x128xbf16, #tpu.memory_space<vmem>>, %arg5: memref<1x128xf32, #tpu.memory_space<vmem>>, %arg6: memref<1x1x128xf32, #tpu.memory_space<vmem>>) attributes {dimension_semantics = [#tpu.dimension_semantics<parallel>], iteration_bounds = array<i64: 2>, scalar_prefetch = 0 : i64, scratch_operands = 0 : i64, tpu.core_type = #tpu.core_type<tc>, window_params = [{transform_indices = @transform_0, window_bounds = array<i64: 1, 10, 32>}, {pipeline_mode = #tpu.pipeline_mode<synchronous>, transform_indices = @transform_1, window_bounds = array<i64: 3, 32, 16>}, {pipeline_mode = #tpu.pipeline_mode<synchronous>, transform_indices = @transform_2, window_bounds = array<i64: 1, 16>}, {pipeline_mode = #tpu.pipeline_mode<synchronous>, transform_indices = @transform_3, window_bounds = array<i64: 16, 128>}, {pipeline_mode = #tpu.pipeline_mode<synchronous>, transform_indices = @transform_4, window_bounds = array<i64: 1, 128>}, {transform_indices = @transform_5, window_bounds = array<i64: 1, 1, 128>}]} {
    %c0 = arith.constant 0 : index
    %c0_0 = arith.constant 0 : index
    %c0_1 = arith.constant 0 : index
    %0 = vector.load %arg1[%c0, %c0_0, %c0_1] : memref<1x10x32xbf16, #tpu.memory_space<vmem>>, vector<1x10x32xbf16>
    %cst = arith.constant 0.000000e+00 : f32
    %1 = vector.broadcast %cst : f32 to vector<8x16xf32>
    %2 = vector.extract_strided_slice %0 {offsets = [0, 0, 0], sizes = [1, 8, 32], strides = [1, 1, 1]} : vector<1x10x32xbf16> to vector<1x8x32xbf16>
    %3 = vector.shape_cast %2 : vector<1x8x32xbf16> to vector<8x32xbf16>
    %c0_2 = arith.constant 0 : index
    %c0_3 = arith.constant 0 : index
    %c0_4 = arith.constant 0 : index
    %4 = vector.load %arg2[%c0_2, %c0_3, %c0_4] : memref<3x32x16xbf16, #tpu.memory_space<vmem>>, vector<1x32x16xbf16>
    %5 = vector.shape_cast %4 : vector<1x32x16xbf16> to vector<32x16xbf16>
    %cst_5 = arith.constant dense<0.000000e+00> : vector<8x16xf32>
    %6 = tpu.matmul %3, %5, %cst_5 {dimension_numbers = #tpu.dot_dimension_numbers<[1], [0], [0], [1], [0, 0, 1, 1], [], []>} : vector<8x32xbf16>, vector<32x16xbf16>, vector<8x16xf32> -> vector<8x16xf32>
    %7 = arith.addf %1, %6 : vector<8x16xf32>
    %8 = vector.extract_strided_slice %0 {offsets = [0, 1, 0], sizes = [1, 8, 32], strides = [1, 1, 1]} : vector<1x10x32xbf16> to vector<1x8x32xbf16>
    %9 = vector.shape_cast %8 : vector<1x8x32xbf16> to vector<8x32xbf16>
    %c1 = arith.constant 1 : index
    %c0_6 = arith.constant 0 : index
    %c0_7 = arith.constant 0 : index
    %10 = vector.load %arg2[%c1, %c0_6, %c0_7] : memref<3x32x16xbf16, #tpu.memory_space<vmem>>, vector<1x32x16xbf16>
    %11 = vector.shape_cast %10 : vector<1x32x16xbf16> to vector<32x16xbf16>
    %cst_8 = arith.constant dense<0.000000e+00> : vector<8x16xf32>
    %12 = tpu.matmul %9, %11, %cst_8 {dimension_numbers = #tpu.dot_dimension_numbers<[1], [0], [0], [1], [0, 0, 1, 1], [], []>} : vector<8x32xbf16>, vector<32x16xbf16>, vector<8x16xf32> -> vector<8x16xf32>
    %13 = arith.addf %7, %12 : vector<8x16xf32>
    %14 = vector.extract_strided_slice %0 {offsets = [0, 2, 0], sizes = [1, 8, 32], strides = [1, 1, 1]} : vector<1x10x32xbf16> to vector<1x8x32xbf16>
    %15 = vector.shape_cast %14 : vector<1x8x32xbf16> to vector<8x32xbf16>
    %c2 = arith.constant 2 : index
    %c0_9 = arith.constant 0 : index
    %c0_10 = arith.constant 0 : index
    %16 = vector.load %arg2[%c2, %c0_9, %c0_10] : memref<3x32x16xbf16, #tpu.memory_space<vmem>>, vector<1x32x16xbf16>
    %17 = vector.shape_cast %16 : vector<1x32x16xbf16> to vector<32x16xbf16>
    %cst_11 = arith.constant dense<0.000000e+00> : vector<8x16xf32>
    %18 = tpu.matmul %15, %17, %cst_11 {dimension_numbers = #tpu.dot_dimension_numbers<[1], [0], [0], [1], [0, 0, 1, 1], [], []>} : vector<8x32xbf16>, vector<32x16xbf16>, vector<8x16xf32> -> vector<8x16xf32>
    %19 = arith.addf %13, %18 : vector<8x16xf32>
    %20 = vector.shape_cast %19 : vector<8x16xf32> to vector<1x8x16xf32>
    %cst_12 = arith.constant dense<0xFF800000> : vector<1x16xf32>
    %21 = vector.multi_reduction <maximumf>, %20, %cst_12 [1] : vector<1x8x16xf32> to vector<1x16xf32>
    %c0_13 = arith.constant 0 : index
    %c0_14 = arith.constant 0 : index
    %22 = vector.load %arg3[%c0_13, %c0_14] : memref<1x16xf32, #tpu.memory_space<vmem>>, vector<1x16xf32>
    %23 = arith.addf %21, %22 : vector<1x16xf32>
    %cst_15 = arith.constant 0.000000e+00 : f32
    %24 = vector.broadcast %cst_15 : f32 to vector<1x16xf32>
    %25 = arith.maximumf %23, %24 : vector<1x16xf32>
    %26 = arith.truncf %25 : vector<1x16xf32> to vector<1x16xbf16>
    %c0_16 = arith.constant 0 : index
    %c0_17 = arith.constant 0 : index
    %27 = vector.load %arg4[%c0_16, %c0_17] : memref<16x128xbf16, #tpu.memory_space<vmem>>, vector<16x128xbf16>
    %cst_18 = arith.constant dense<0.000000e+00> : vector<1x128xf32>
    %28 = tpu.matmul %26, %27, %cst_18 {dimension_numbers = #tpu.dot_dimension_numbers<[1], [0], [0], [1], [0, 0, 1, 1], [], []>} : vector<1x16xbf16>, vector<16x128xbf16>, vector<1x128xf32> -> vector<1x128xf32>
    %c0_19 = arith.constant 0 : index
    %c0_20 = arith.constant 0 : index
    %29 = vector.load %arg5[%c0_19, %c0_20] : memref<1x128xf32, #tpu.memory_space<vmem>>, vector<1x128xf32>
    %30 = arith.addf %28, %29 : vector<1x128xf32>
    %cst_21 = arith.constant dense<0xFF800000> : vector<1xf32>
    %31 = vector.multi_reduction <maximumf>, %30, %cst_21 [1] : vector<1x128xf32> to vector<1xf32>
    %32 = vector.shape_cast %31 : vector<1xf32> to vector<1x1xf32>
    %33 = vector.broadcast %32 : vector<1x1xf32> to vector<1x128xf32>
    %34 = arith.subf %30, %33 : vector<1x128xf32>
    %35 = math.exp %34 : vector<1x128xf32>
    %cst_22 = arith.constant dense<0.000000e+00> : vector<1xf32>
    %36 = vector.multi_reduction <add>, %35, %cst_22 [1] : vector<1x128xf32> to vector<1xf32>
    %37 = vector.shape_cast %36 : vector<1xf32> to vector<1x1xf32>
    %38 = tpu.reciprocal %37 {approx = true} : vector<1x1xf32> -> vector<1x1xf32>
    %39 = vector.broadcast %38 : vector<1x1xf32> to vector<1x128xf32>
    %40 = arith.mulf %35, %39 : vector<1x128xf32>
    %41 = vector.shape_cast %40 : vector<1x128xf32> to vector<1x1x128xf32>
    %c0_23 = arith.constant 0 : index
    %c0_24 = arith.constant 0 : index
    %c0_25 = arith.constant 0 : index
    %42 = vector.load %arg6[%c0_23, %c0_24, %c0_25] : memref<1x1x128xf32, #tpu.memory_space<vmem>>, vector<1x1x128xf32>
    tpu.vector_store %arg6[%c0_23, %c0_24, %c0_25], %41 {strides = array<i32>} : memref<1x1x128xf32, #tpu.memory_space<vmem>>, vector<1x1x128xf32>,
    return
  }
  func.func @transform_0(%arg0: i32) -> (i32, i32, i32) {
    %c0_i32 = arith.constant 0 : i32
    %c0_i32_0 = arith.constant 0 : i32
    %c0_i32_1 = arith.constant 0 : i32
    return %arg0, %c0_i32, %c0_i32_0 : i32, i32, i32
  }
  func.func @transform_1(%arg0: i32) -> (i32, i32, i32) {
    %c0_i32 = arith.constant 0 : i32
    %c0_i32_0 = arith.constant 0 : i32
    %c0_i32_1 = arith.constant 0 : i32
    %c0_i32_2 = arith.constant 0 : i32
    return %c0_i32, %c0_i32_0, %c0_i32_1 : i32, i32, i32
  }
  func.func @transform_2(%arg0: i32) -> (i32, i32) {
    %c0_i32 = arith.constant 0 : i32
    %c0_i32_0 = arith.constant 0 : i32
    %c0_i32_1 = arith.constant 0 : i32
    return %c0_i32, %c0_i32_0 : i32, i32
  }
  func.func @transform_3(%arg0: i32) -> (i32, i32) {
    %c0_i32 = arith.constant 0 : i32
    %c0_i32_0 = arith.constant 0 : i32
    %c0_i32_1 = arith.constant 0 : i32
    return %c0_i32, %c0_i32_0 : i32, i32
  }
  func.func @transform_4(%arg0: i32) -> (i32, i32) {
    %c0_i32 = arith.constant 0 : i32
    %c0_i32_0 = arith.constant 0 : i32
    %c0_i32_1 = arith.constant 0 : i32
    return %c0_i32, %c0_i32_0 : i32, i32
  }
  func.func @transform_5(%arg0: i32) -> (i32, i32, i32) {
    %c0_i32 = arith.constant 0 : i32
    %c0_i32_0 = arith.constant 0 : i32
    %c0_i32_1 = arith.constant 0 : i32
    return %arg0, %c0_i32, %c0_i32_0 : i32, i32, i32
  }
}

</mosaic_0001>

<bundles_post_ra>
// kernel: tpu_custom_call.1
= control target key start
LH: loop header
LB: loop body
LE: loop exit
PB: predicated region body
PF: predicated region fallthrough
CT: control target
= control target key end

     0   :  { %10 = vsyncpa [#allocation3], 0  ;;  %s766_s0 = inlined_call_operand.vmem [shape: bf16[2,10,32], index: 0, kind: input, shape index: {}]   ;;  %s767_s1 = inlined_call_operand.vmem [shape: bf16[3,32,16], index: 1, kind: input, shape index: {}]   ;;  %s768_s2 = inlined_call_operand.vmem [shape: f32[1,16], index: 2, kind: input, shape index: {}]   ;;  %s769_s3 = inlined_call_operand.vmem [shape: bf16[16,128], index: 3, kind: input, shape index: {}]   ;;  %s770_s4 = inlined_call_operand.vmem [shape: f32[1,128], index: 4, kind: input, shape index: {}]   ;;  %s771_s5 = inlined_call_operand.hbm [shape: f32[2,1,128], index: 5, kind: output, shape index: {}]  }
   0x1   :  { %12 = vsyncpa [#allocation3 + $0x1], 0  ;;  %s654_s18 = smov 0   ;;  %s656_s19 = smov 0  }
   0x2   :  { %s658_s20 = smov 0   ;;  %s660_s21 = smov 0  }
   0x3 LB: > { %s675_s22 = sadd.s32 4294967295, %s622_s21   ;;  %s456_s23 = sadd.s32 4294967294, %s622_s21   ;;  %s622_s21 = sphi %s660_s21, %s777_s21   ;;  %s618_s20 = sphi %s658_s20, %s776_s20   ;;  %s614_s19 = sphi %s656_s19, %s775_s19   ;;  %s610_s18 = sphi %s654_s18, %s774_s18  }
   0x4   : > { %s679_s24 = sadd.s32 1, %s622_s21   ;;  %s135_s25 = sadd.s32 1, %s618_s20 }
   0x5   : > { %s132_s26 = ssub.s32 %s622_s21, %s679_s24  ;;  %p145_p0 = scmp.ne.s32.totalorder %s618_s20, %s614_s19 }
   0x6   : > { %p133_p1 = scmp.eq.s32.totalorder %s132_s26, 0  ;;  %p146_p2 = scmp.eq.s32.totalorder %s675_s22, 1 }
   0x7   : > { %p151_p3 = scmp.ne.s32.totalorder %s614_s19, %s610_s18  ;;  %p152_p4 = scmp.eq.s32.totalorder %s456_s23, 1 }
   0x8   : > { %s690_s27 = scalar_select %p133_p1, %s618_s20, %s135_s25  }
   0x9   : > { %p692_p5 = por %p146_p2, %p145_p0  ;;  %p696_p6 = por %p152_p4, %p151_p3 }
   0xa   : > { %p459_p7 = scmp.ge.s32.totalorder %s622_s21, 1  ;;  %p190_p8 = scmp.lt.s32.totalorder %s622_s21, 3 }
   0xc   : > { %p191_p9 = pnand %p459_p7, %p190_p8 }
   0xd   : > { %p217_p10 = scmp.lt.s32.totalorder (!%p191_p9), %s675_s22, 1  ;;  %s215_s12 = sand.u32 (!%p191_p9), 1, %s614_s19  }
   0xe   : > { %194 = sbr.rel (%p191_p9) target bundleno = 573 (0x23d), region = 40  ;;  %s216_s16 = scalar_lea.vmem (!%p191_p9), [#allocation2], %s215_s12 }
   0xf   : > { %s399_s17 = sshll.u32 (!%p191_p9), %s216_s16, 4  ;;  %s389_s25 = scalar_lea.sflag (!%p191_p9), [#allocation3], %s215_s12  ;;  %s400_s17 = int_to_ptr.vmem [resolvable:$true] %s399_s17 }
  0x13   : > { %v511_v0 = vld [vmem:[%s767_s1 + $0x8] sm:$0xff]  ;;  %v513_v2 = vld [vmem:[%s767_s1 + $0x18] sm:$0xff]  ;;  %v510_v3 = vld [vmem:[%s767_s1] sm:$0xff]  ;;  %s218_s15 = scalar_select %p217_p10, %s675_s22, 1  ;;  %vm258_vm0 = vcmask 261120   ;;  %vm338_vm1 = vcmask 130048  }
  0x14   : > { %v515_v1 = vld [vmem:[%s767_s1 + $0x28] sm:$0xff]  ;;  %296 = vmatpush.bf16.msra.mxu1 %v511_v0  ;;  %v514_v4 = vld [vmem:[%s767_s1 + $0x20] sm:$0xff]  ;;  %268 = vmatpush.bf16.msra.mxu0 %v513_v2  ;;  %v512_v5 = vld [vmem:[%s767_s1 + $0x10] sm:$0xff]  ;;  %vm375_vm2 = vcmask 1040384  }
  0x15   : > { %330 = vmatpush.bf16.msra.mxu2 %v515_v1  ;;  %s508_s23 = sshll.u32 %s218_s15, 3  ;;  %v516_v15 = vld [vmem:[%s769_s3] sm:$0xff]  ;;  %s397_s15 = scalar_lea.hbm %s771_s5, %s675_s22 }
  0x16   : > { %s221_s30 = scalar_lea.vmem %s766_s0, %s508_s23  ;;  %369 = vmatpush.bf16.msra.mxu3 %v516_v15  ;;  %v346_v30 = vld [vmem:[%s768_s2] sm:$0x1]  ;;  %s401_s23 = sshll.u32 %s397_s15, 4  ;;  %s402_s23 = int_to_ptr.hbm [resolvable:$true] %s401_s23 }
  0x17   : > { %v223_v6 = vld [vmem:[%s221_s30] sm:$0xf]  ;;  %v509_v8 = vld [vmem:[%s221_s30] sm:$0x10]  ;;  %s574_s26 = sshra.s32 %s402_s23, 4  ;;  %s580_s22 = scalar_lea.hbm %s771_s5, 2  ;;  %s575_s26 = int_to_ptr.hbm [resolvable:$true] %s574_s26 }
  0x18   : > { %297 = vmatpush.bf16.msra.mxu1 %v510_v3  ;;  %v468_v7 = vld [vmem:[%s221_s30] sm:$0xf]  ;;  %269 = vmatpush.bf16.msra.mxu0 %v512_v5  ;;  %s576_s30 = scalar_lea.hbm %s575_s26, 1  ;;  %p581_p0 = scmp.lt.s32.totalorder %s575_s26, %s771_s5 }
  0x19   : > { %331 = vmatpush.bf16.msra.mxu2 %v514_v4  ;;  %v469_v9 = vor.u32 %v509_v8, %v468_v7  ;;  %v352_v35 = vld [vmem:[%s770_s4] sm:$0x1]  ;;  %p577_p11 = scmp.ne.s32.totalorder %s575_s26, %s576_s30  ;;  %p582_p1 = scmp.lt.s32.totalorder %s580_s22, %s576_s30 }
  0x1b   : > { %487 = vmatmul.msk.bf16.vlgmr.msra.gmra.mxu1 %vm258_vm0, %v223_v6  ;;  %v308_v10 = vrot.slane %v469_v9, 1  ;;  %v240_v11 = vshrl.u32 %v469_v9, 16  ;;  %v242_v12 = vshll.u32 %v469_v9, 16  ;;  %p578_p12 = pnand %p577_p11, %p692_p5  ;;  %p583_p2 = por %p582_p1, %p581_p0 }
  0x1d   : > { %500 = vmatmul.msk.bf16.vlgmr.msra.gmra.mxu2 %vm258_vm0, %v308_v10  ;;  %v244_v13 = vrot.slane %v242_v12, 1  ;;  %p579_p13 = pneg %p578_p12 }
  0x1f   : > { %v245_v14 = vor.u32 %v244_v13, %v240_v11  ;;  %p584_p3 = pnand %p583_p2, %p579_p13 }
  0x21   : > { %478 = vmatmul.msk.bf16.vlgmr.msra.gmra.mxu0 %vm258_vm0, %v245_v14 }
  0x98   : > { %v299_v16 = vpop.f32.mrf.mxu1 }
  0x9e   : > { %v271_v17 = vpop.f32.mrf.mxu0 }
  0x9f   : > { %v300_v18 = vadd.f32 %v299_v16, %v271_v17 }
  0xa0   : > { %v333_v19 = vpop.f32.mrf.mxu2  ;;  %v301_v20 = vpop.f32.mrf.mxu1 }
  0xa1   : > { %v337_v21 = vadd.f32 %v333_v19, %v300_v18 }
  0xa3   : > { %v339_v22 = vsel %vm338_vm1, %v337_v21, -inf }
  0xa4   : > { %v340_v23 = vrot.slane %v339_v22, 4 }
  0xa6   : > { %v273_v24 = vpop.f32.mrf.mxu0  ;;  %v341_v25 = vmax.f32 %v339_v22, %v340_v23 }
  0xa8   : > { %v335_v26 = vpop.f32.mrf.mxu2  ;;  %v342_v27 = vrot.slane %v341_v25, 2 }
  0xaa   : > { %v343_v28 = vmax.f32 %v341_v25, %v342_v27 }
  0xac   : > { %v344_v29 = vrot.slane %v343_v28, 1 }
  0xae   : > { %v345_v31 = vmax.f32 %v343_v28, %v344_v29 }
  0xb0   : > { %v347_v32 = vadd.f32 %v346_v30, %v345_v31 }
  0xb2   : > { %v348_v33 = vmax.f32 %v347_v32, 0.0 }
  0xb4   : > { %v349_v34 = vpack.c.bf16 %v348_v33, %v348_v33 }
  0xb6   : > { %505 = vmatmul.msk.bf16.vlgmr.msra.gmra.mxu3 %vm338_vm1, %v349_v34 }
 0x139   : > { %v371_v36 = vpop.f32.mrf.mxu3 }
 0x13a   : > { %v372_v37 = vadd.f32 %v371_v36, %v352_v35 }
 0x13c   : > { %v376_v38 = vsel %vm375_vm2, %v372_v37, -inf }
 0x13d   : > { %377 = vmax.xlane.f32.xlu0 %v376_v38 }
 0x141   : > { %v373_v39 = vpop.f32.mrf.mxu3 }
 0x1b0   : > { %v378_v40 = vpop.xlane.xlu0 %377 }
 0x1b1   : > { %v379_v41 = vsub.f32 %v372_v37, %v378_v40 }
 0x1b3   : > { %v380_v42 = vmul.f32 1.442695, %v379_v41 }
 0x1b5   : > { %556 = vpow2.f32 %v380_v42 }
 0x1bb   : > { %v557_v43 = vpop.eup %556 }
 0x1bc   : > { %v382_v44 = vsel %vm375_vm2, %v557_v43, 0.0 }
 0x1bd   : > { %383 = vadd.xlane.f32.xlu0 %v382_v44 }
 0x230   : > { %v384_v45 = vpop.xlane.xlu0 %383 }
 0x231   : > { %558 = vrcp.f32 %v384_v45 }
 0x237   : > { %v559_v46 = vpop.eup %558 }
 0x238   : > { %v386_v47 = vmul.f32 %v559_v46, %v557_v43 }
 0x23a   : > { %387 = vst [vmem:[%s216_s16] sm:$0x1] %v386_v47 }
 0x23b   : > { %587 = shalt.err (!%p584_p3)
}
 0x23c   : > { %517 = dma.vmem_to_hbm [thread:$0]  (%p692_p5), %s400_s17, 16, %s402_s23, %s389_s25  }
 0x23d PF: > { %p523_p4 = scmp.ge.s32.totalorder %s622_s21, 2  ;;  %s413_s10 = sand.u32 1, %s610_s18  }
 0x23e   : > { %s414_s11 = scalar_lea.sflag [#allocation3], %s413_s10 }
 0x23f   : > { %p520_p7 = pnand %p523_p4, %p696_p6 }
 0x241   : > { %p521_p8 = pneg %p520_p7 }
 0x243   : > { %605 = dma.done.wait (%p521_p8), %s414_s11, 16  }
 0x244   : > { %607 = vsyncadd (%p521_p8), %s414_s11, 4294967280  ;;  %p15_p9 = scmp.ge.s32.totalorder %s679_s24, 4   ;;  %s774_s18 = smov %s614_s19 }
 0x245   : > { %s775_s19 = smov %s618_s20  ;;  %s776_s20 = smov %s690_s27 }
 0x246   : > { %s777_s21 = smov %s679_s24  ;;  %17 = sbr.rel (!%p15_p9) target bundleno = 3 (0x3), region = 77 }
 0x24b   :  { %419 = vsyncpa [#allocation3], 1 }
 0x24c   :  { %421 = vsyncpa [#allocation3 + $0x1], 1 }

</bundles_post_ra>
